<compile_context>
chip_gen: v7x
topology: tpu7x:2x2x1
jax: 0.10.0
libtpu: 0.0.40
codegen_flags: <defaults>
</compile_context>

<pallas_src>
import functools

import jax
import jax.numpy as jnp
from jax import lax
from jax.experimental import pallas as pl
from jax.experimental.pallas import tpu as pltpu


# ----------------------------------------------------------------------------
# Generation-aware VMEM budget.
# ----------------------------------------------------------------------------
@functools.lru_cache(maxsize=None)
def _vmem_limit_bytes():
    cap = 64 * 1024 * 1024          # conservative default (v7x per-TC physical VMEM)
    try:
        info = pltpu.get_tpu_info()
        cap = int(getattr(info, "vmem_capacity_bytes", cap))
    except Exception:
        pass
    return int(min(cap * 3 // 4, 100 * 1024 * 1024))


def _compiler_params():
    return pltpu.CompilerParams(
        dimension_semantics=("parallel",),
        vmem_limit_bytes=_vmem_limit_bytes())


# ----------------------------------------------------------------------------
# Shared math helpers (operate on values already resident in vregs/VMEM).
# ----------------------------------------------------------------------------
def _layer_norm(y, gamma, beta, eps=1e-5):
    mean = jnp.mean(y, axis=-1, keepdims=True)
    var = jnp.mean(jnp.square(y - mean), axis=-1, keepdims=True)
    return (y - mean) * lax.rsqrt(var + eps) * gamma + beta


def _attn_core(residual, qp, kp, vp, wfc3, bfc, gamma, beta, *,
               n_head, d_k, d_v, inv_t, cdt, sfm_ref=None, attn_ref=None):
    """Head-batched scaled-dot-product attention + output projection + residual + LN.

    residual: (Lq, d_model) f32
    qp: (Lq, n_head*d_k), kp: (Lk, n_head*d_k), vp: (Lk, n_head*d_v) in compute dtype
    wfc3: (n_head, d_v, d_model) output-projection weight (per-head row groups)
    Returns (Lq, d_model) f32.
    """
    def split_heads(m2d, d):
        # one relayout up front; all subsequent matmuls are batched over heads.
        if n_head == 1:
            return m2d[None, :, :]
        return jnp.stack([m2d[:, h * d:(h + 1) * d] for h in range(n_head)], axis=0)

    qh = split_heads(qp, d_k)                      # (h, Lq, d_k)
    kh = split_heads(kp, d_k)                      # (h, Lk, d_k)
    vh = split_heads(vp, d_v)                      # (h, Lk, d_v)

    # scores = q @ k^T / temperature, batched over heads (single MXU call).
    scores = jnp.einsum('hqd,hkd->hqk', qh, kh,
                        preferred_element_type=jnp.float32) * inv_t
    mx = jnp.max(scores, axis=-1, keepdims=True)
    e = jnp.exp(scores - mx)
    p = e / jnp.sum(e, axis=-1, keepdims=True)     # exact softmax (f32)

    if attn_ref is not None:
        # PyTorch ScaledDotProductAttention returns (post-softmax, pre-softmax/temp).
        attn_ref[0] = scores.astype(attn_ref.dtype)
        sfm_ref[0] = p.astype(sfm_ref.dtype)

    ctx = jnp.einsum('hqk,hkd->hqd', p.astype(cdt), vh,
                     preferred_element_type=jnp.float32)   # (h, Lq, d_v)

    # Output projection distributed over heads: lane-dense (d_model) accumulator,
    # no head-concatenate.  residual + fc bias folded into the accumulator start.
    y = residual + bfc
    for h in range(n_head):
        y = y + jnp.dot(ctx[h].astype(cdt), wfc3[h],
                        preferred_element_type=jnp.float32)
    return _layer_norm(y, gamma, beta)


# ----------------------------------------------------------------------------
# Kernel 1: fused self-attention MHA (q = k = v = x), one batch element per step.
#   Single wide fused QKV projection matmul:  proj = x @ [Wq | Wk | Wv] + [bq|bk|bv]
# ----------------------------------------------------------------------------
def _mha_self_kernel(x_ref, wqkv_ref, bqkv_ref, wfc_ref, bfc_ref, g_ref, be_ref,
                     o_ref, *, n_head, d_k, d_v, inv_t):
    x = x_ref[0]                                   # (L, d_model), native compute dtype
    cdt = x.dtype
    proj = (jnp.dot(x, wqkv_ref[...], preferred_element_type=jnp.float32)
            + bqkv_ref[...].astype(jnp.float32))
    hk, hv = n_head * d_k, n_head * d_v
    qp = proj[:, :hk].astype(cdt)
    kp = proj[:, hk:2 * hk].astype(cdt)
    vp = proj[:, 2 * hk:2 * hk + hv].astype(cdt)
    y = _attn_core(x.astype(jnp.float32), qp, kp, vp,
                   wfc_ref[...], bfc_ref[...].astype(jnp.float32),
                   g_ref[...].astype(jnp.float32), be_ref[...].astype(jnp.float32),
                   n_head=n_head, d_k=d_k, d_v=d_v, inv_t=inv_t, cdt=cdt)
    o_ref[0] = y.astype(o_ref.dtype)


def mha_self(p, x, *, n_head, d_k, d_v):
    """Self-attention MHA block: x (B, L, d_model) -> (B, L, d_model)."""
    B, L, d_model = x.shape
    hk, hv = n_head * d_k, n_head * d_v
    inv_t = 1.0 / (float(d_k) ** 0.5)
    kernel = functools.partial(_mha_self_kernel, n_head=n_head, d_k=d_k, d_v=d_v,
                               inv_t=inv_t)
    return pl.pallas_call(
        kernel,
        out_shape=jax.ShapeDtypeStruct((B, L, d_model), x.dtype),
        grid=(B,),
        in_specs=[
            pl.BlockSpec((1, L, d_model), lambda b: (b, 0, 0)),
            pl.BlockSpec((d_model, 2 * hk + hv), lambda b: (0, 0)),
            pl.BlockSpec((1, 2 * hk + hv), lambda b: (0, 0)),
            pl.BlockSpec((n_head, d_v, d_model), lambda b: (0, 0, 0)),
            pl.BlockSpec((1, d_model), lambda b: (0, 0)),
            pl.BlockSpec((1, d_model), lambda b: (0, 0)),
            pl.BlockSpec((1, d_model), lambda b: (0, 0)),
        ],
        out_specs=pl.BlockSpec((1, L, d_model), lambda b: (b, 0, 0)),
        compiler_params=_compiler_params(),
    )(x, p["w_qkv"], p["b_qkv"], p["w_fc3"], p["b_fc"], p["ln_g"], p["ln_b"])


# ----------------------------------------------------------------------------
# Kernel 2: fused cross-attention MHA + position-wise FFN (per batch element).
#   qp = q @ Wq + bq ; kvp = kv @ [Wk|Wv] + [bk|bv] ; MHA epilogue ; then
#   z = [LN]( relu(y @ W1 + b1) @ W2 + b2 + y )
# ----------------------------------------------------------------------------
def _cross_attn_ffn_kernel(q_ref, kv_ref,
                           wq_ref, bq_ref, wkv_ref, bkv_ref, wfc_ref, bfc_ref,
                           ag_ref, ab_ref,
                           w1_ref, b1_ref, w2_ref, b2_ref, fg_ref, fb_ref,
                           o_ref, *attn_refs, n_head, d_k, d_v, inv_t, norm):
    qx = q_ref[0]                                  # (Lq, d_model)
    kvx = kv_ref[0]                                # (Lk, d_model)
    cdt = qx.dtype
    qp = (jnp.dot(qx, wq_ref[...], preferred_element_type=jnp.float32)
          + bq_ref[...].astype(jnp.float32)).astype(cdt)
    kvp = (jnp.dot(kvx, wkv_ref[...], preferred_element_type=jnp.float32)
           + bkv_ref[...].astype(jnp.float32))
    hk = n_head * d_k
    kp = kvp[:, :hk].astype(cdt)
    vp = kvp[:, hk:].astype(cdt)

    sfm_ref = attn_refs[0] if attn_refs else None
    attn_ref = attn_refs[1] if attn_refs else None
    y = _attn_core(qx.astype(jnp.float32), qp, kp, vp,
                   wfc_ref[...], bfc_ref[...].astype(jnp.float32),
                   ag_ref[...].astype(jnp.float32), ab_ref[...].astype(jnp.float32),
                   n_head=n_head, d_k=d_k, d_v=d_v, inv_t=inv_t, cdt=cdt,
                   sfm_ref=sfm_ref, attn_ref=attn_ref)

    # fused position-wise FFN (1x1 conv == per-token linear); dropout = identity.
    h = jnp.maximum(jnp.dot(y.astype(cdt), w1_ref[...],
                            preferred_element_type=jnp.float32)
                    + b1_ref[...].astype(jnp.float32), 0.0)
    z = (jnp.dot(h.astype(cdt), w2_ref[...], preferred_element_type=jnp.float32)
         + b2_ref[...].astype(jnp.float32)) + y
    if norm:
        z = _layer_norm(z, fg_ref[...].astype(jnp.float32),
                        fb_ref[...].astype(jnp.float32))
    o_ref[0] = z.astype(o_ref.dtype)


def mha_cross_ffn(pa, pf, q, kv, *, n_head, d_k, d_v, norm=True, with_attn=False):
    """Cross-attention MHA + FFN: q (B, Lq, d_model), kv (B, Lk, d_model)."""
    B, Lq, d_model = q.shape
    _, Lk, _ = kv.shape
    hk, hv = n_head * d_k, n_head * d_v
    d_inner = pf["w1"].shape[1]
    inv_t = 1.0 / (float(d_k) ** 0.5)
    kernel = functools.partial(_cross_attn_ffn_kernel, n_head=n_head, d_k=d_k,
                               d_v=d_v, inv_t=inv_t, norm=norm)

    o_shape = jax.ShapeDtypeStruct((B, Lq, d_model), q.dtype)
    o_spec = pl.BlockSpec((1, Lq, d_model), lambda b: (b, 0, 0))
    if with_attn:
        # Attention matrices only for the consumer path, in the input dtype.
        a_shape = jax.ShapeDtypeStruct((B, n_head, Lq, Lk), q.dtype)
        a_spec = pl.BlockSpec((1, n_head, Lq, Lk), lambda b: (b, 0, 0, 0))
        out_shape = (o_shape, a_shape, a_shape)
        out_specs = (o_spec, a_spec, a_spec)
    else:
        out_shape, out_specs = o_shape, o_spec

    res = pl.pallas_call(
        kernel,
        out_shape=out_shape,
        grid=(B,),
        in_specs=[
            pl.BlockSpec((1, Lq, d_model), lambda b: (b, 0, 0)),
            pl.BlockSpec((1, Lk, d_model), lambda b: (b, 0, 0)),
            pl.BlockSpec((d_model, hk), lambda b: (0, 0)),
            pl.BlockSpec((1, hk), lambda b: (0, 0)),
            pl.BlockSpec((d_model, hk + hv), lambda b: (0, 0)),
            pl.BlockSpec((1, hk + hv), lambda b: (0, 0)),
            pl.BlockSpec((n_head, d_v, d_model), lambda b: (0, 0, 0)),
            pl.BlockSpec((1, d_model), lambda b: (0, 0)),
            pl.BlockSpec((1, d_model), lambda b: (0, 0)),
            pl.BlockSpec((1, d_model), lambda b: (0, 0)),
            pl.BlockSpec((d_model, d_inner), lambda b: (0, 0)),
            pl.BlockSpec((1, d_inner), lambda b: (0, 0)),
            pl.BlockSpec((d_inner, d_model), lambda b: (0, 0)),
            pl.BlockSpec((1, d_model), lambda b: (0, 0)),
            pl.BlockSpec((1, d_model), lambda b: (0, 0)),
            pl.BlockSpec((1, d_model), lambda b: (0, 0)),
        ],
        out_specs=out_specs,
        compiler_params=_compiler_params(),
    )(q, kv, pa["w_q"], pa["b_q"], pa["w_kv"], pa["b_kv"], pa["w_fc3"], pa["b_fc"],
      pa["ln_g"], pa["ln_b"], pf["w1"], pf["b1"], pf["w2"], pf["b2"],
      pf["ln_g"], pf["ln_b"])

    if with_attn:
        out, sfm, attn = res
        # PyTorch layout: (n_head * sz_b, Lq, Lk), head-major on axis 0.
        sfm = sfm.transpose(1, 0, 2, 3).reshape(n_head * B, Lq, Lk)
        attn = attn.transpose(1, 0, 2, 3).reshape(n_head * B, Lq, Lk)
        return out, sfm, attn
    return res


# ----------------------------------------------------------------------------
# DecoderLayer / Decoder forward (glue in plain JAX; all math inside Pallas).
# ----------------------------------------------------------------------------
def decoder_layer_forward(lp, dec_input, enc_output, *, d_k, d_v, norm=True,
                          need_attn=False):
    n_head = lp["n_head"]
    # self-attention; its attn matrices are never consumed by Decoder, so they
    # are not materialized (saves the quadratic HBM writeback).
    dec_output = mha_self(lp["slf"], dec_input, n_head=n_head, d_k=d_k, d_v=d_v)
    # encoder-decoder attention + position-wise FFN, fused in one pallas_call.
    if need_attn:
        dec_output, sfm_attn, dec_enc_attn = mha_cross_ffn(
            lp["enc"], lp["ffn"], dec_output, enc_output,
            n_head=n_head, d_k=d_k, d_v=d_v, norm=norm, with_attn=True)
        return dec_output, sfm_attn, dec_enc_attn
    dec_output = mha_cross_ffn(lp["enc"], lp["ffn"], dec_output, enc_output,
                               n_head=n_head, d_k=d_k, d_v=d_v, norm=norm,
                               with_attn=False)
    return dec_output, None, None


def decoder_forward(layers, dec_input, enc_output, *, d_k, d_v,
                    return_attns=False, norm=True):
    dec_output = dec_input
    last_sfm, last_dec_enc = None, None
    n = len(layers)
    for i, lp in enumerate(layers):
        # PyTorch keeps only the LAST layer's attn matrices when return_attns=True,
        # so only that layer materializes them.
        need = return_attns and (i == n - 1)
        dec_output, sfm, dea = decoder_layer_forward(
            lp, dec_output, enc_output, d_k=d_k, d_v=d_v, norm=norm, need_attn=need)
        if need:
            last_sfm, last_dec_enc = sfm, dea
    if return_attns:
        return dec_output, last_sfm, last_dec_enc
    return dec_output


# ----------------------------------------------------------------------------
# Parameter initialization (weights stored transposed vs. torch nn.Linear and
# laid out in the fused / per-head-batched layouts the kernels consume).
# Pass dtype=jnp.bfloat16 to run all matmuls with bf16 operands (f32 accumulate).
# ----------------------------------------------------------------------------
def _dense(kw, kb, d_in, d_out, dtype):
    w = jax.random.normal(kw, (d_in, d_out), dtype) * (2.0 / (d_in + d_out)) ** 0.5
    b = jax.random.normal(kb, (1, d_out), dtype) * 0.01
    return w, b


def init_mha_params(key, n_head, d_model, d_k, d_v, dtype=jnp.float32):
    ks = jax.random.split(key, 8)
    w_q, b_q = _dense(ks[0], ks[1], d_model, n_head * d_k, dtype)
    w_k, b_k = _dense(ks[2], ks[3], d_model, n_head * d_k, dtype)
    w_v, b_v = _dense(ks[4], ks[5], d_model, n_head * d_v, dtype)
    w_fc, b_fc = _dense(ks[6], ks[7], n_head * d_v, d_model, dtype)
    return {
        # fused projection layouts
        "w_qkv": jnp.concatenate([w_q, w_k, w_v], axis=1),
        "b_qkv": jnp.concatenate([b_q, b_k, b_v], axis=1),
        "w_q": w_q, "b_q": b_q,
        "w_kv": jnp.concatenate([w_k, w_v], axis=1),
        "b_kv": jnp.concatenate([b_k, b_v], axis=1),
        # output projection grouped per head (for the distributed/accumulated form)
        "w_fc3": w_fc.reshape(n_head, d_v, d_model),
        "b_fc": b_fc,
        "ln_g": jnp.ones((1, d_model), jnp.float32),
        "ln_b": jnp.zeros((1, d_model), jnp.float32),
    }


def init_ffn_params(key, d_model, d_inner, dtype=jnp.float32):
    ks = jax.random.split(key, 4)
    w1, b1 = _dense(ks[0], ks[1], d_model, d_inner, dtype)
    w2, b2 = _dense(ks[2], ks[3], d_inner, d_model, dtype)
    return {"w1": w1, "b1": b1, "w2": w2, "b2": b2,
            "ln_g": jnp.ones((1, d_model), jnp.float32),
            "ln_b": jnp.zeros((1, d_model), jnp.float32)}


def init_decoder_params(key, n_layers, n_head, d_k, d_v, d_model, d_inner,
                        dtype=jnp.float32):
    assert n_layers >= 1
    layers = []
    lkeys = jax.random.split(key, n_layers)
    for i in range(n_layers):
        # Matches the reference Decoder: last layer is built with n_head = 1.
        heads = n_head if i < n_layers - 1 else 1
        k_slf, k_enc, k_ffn = jax.random.split(lkeys[i], 3)
        layers.append({
            "n_head": heads,
            "slf": init_mha_params(k_slf, heads, d_model, d_k, d_v, dtype),
            "enc": init_mha_params(k_enc, heads, d_model, d_k, d_v, dtype),
            "ffn": init_ffn_params(k_ffn, d_model, d_inner, dtype),
        })
    return layers


if __name__ == "__main__":
    n_layers, n_head, d_k, d_v = 2, 4, 8, 8
    d_model, d_inner = 32, 64
    B, L = 2, 8

    key = jax.random.PRNGKey(0)
    kp, kd, ke = jax.random.split(key, 3)
    params = init_decoder_params(kp, n_layers, n_head, d_k, d_v, d_model, d_inner)

    dec_input = jax.random.normal(kd, (B, L, d_model), jnp.float32)
    enc_output = jax.random.normal(ke, (B, L, d_model), jnp.float32)

    # default path: output only (no quadratic attention-matrix writeback)
    dec_out = decoder_forward(params, dec_input, enc_output, d_k=d_k, d_v=d_v,
                              return_attns=False, norm=True)
    # return_attns path: last layer's enc-attn matrices are materialized
    dec_out2, last_sfm, last_dec_enc = decoder_forward(
        params, dec_input, enc_output, d_k=d_k, d_v=d_v,
        return_attns=True, norm=True)

    jax.block_until_ready((dec_out, dec_out2, last_sfm, last_dec_enc))

    assert dec_out.shape == (B, L, d_model)
    assert dec_out2.shape == (B, L, d_model)
    # last DecoderLayer has n_head = 1 (as in the reference)  ->  (1 * B, Lq, Lk)
    assert last_sfm.shape == (1 * B, L, L)
    assert last_dec_enc.shape == (1 * B, L, L)
    assert bool(jnp.all(jnp.isfinite(dec_out)))
    assert bool(jnp.all(jnp.isfinite(dec_out2)))
    print("KERNEL_OK")
</pallas_src>

<mosaic_0001>
module attributes {stable_mosaic.version = 11 : i64} {
  func.func @_mha_self_kernel(%arg0: i32, %arg1: memref<1x8x32xf32, #tpu.memory_space<vmem>>, %arg2: memref<32x96xf32, #tpu.memory_space<vmem>>, %arg3: memref<1x96xf32, #tpu.memory_space<vmem>>, %arg4: memref<4x8x32xf32, #tpu.memory_space<vmem>>, %arg5: memref<1x32xf32, #tpu.memory_space<vmem>>, %arg6: memref<1x32xf32, #tpu.memory_space<vmem>>, %arg7: memref<1x32xf32, #tpu.memory_space<vmem>>, %arg8: memref<1x8x32xf32, #tpu.memory_space<vmem>>) attributes {dimension_semantics = [#tpu.dimension_semantics<parallel>], iteration_bounds = array<i64: 2>, scalar_prefetch = 0 : i64, scratch_operands = 0 : i64, tpu.core_type = #tpu.core_type<tc>, window_params = [{transform_indices = @transform_0, window_bounds = array<i64: 1, 8, 32>}, {pipeline_mode = #tpu.pipeline_mode<synchronous>, transform_indices = @transform_1, window_bounds = array<i64: 32, 96>}, {pipeline_mode = #tpu.pipeline_mode<synchronous>, transform_indices = @transform_2, window_bounds = array<i64: 1, 96>}, {pipeline_mode = #tpu.pipeline_mode<synchronous>, transform_indices = @transform_3, window_bounds = array<i64: 4, 8, 32>}, {pipeline_mode = #tpu.pipeline_mode<synchronous>, transform_indices = @transform_4, window_bounds = array<i64: 1, 32>}, {pipeline_mode = #tpu.pipeline_mode<synchronous>, transform_indices = @transform_5, window_bounds = array<i64: 1, 32>}, {pipeline_mode = #tpu.pipeline_mode<synchronous>, transform_indices = @transform_6, window_bounds = array<i64: 1, 32>}, {transform_indices = @transform_7, window_bounds = array<i64: 1, 8, 32>}]} {
    %c0 = arith.constant 0 : index
    %c0_0 = arith.constant 0 : index
    %c0_1 = arith.constant 0 : index
    %0 = vector.load %arg1[%c0, %c0_0, %c0_1] : memref<1x8x32xf32, #tpu.memory_space<vmem>>, vector<1x8x32xf32>
    %1 = vector.shape_cast %0 : vector<1x8x32xf32> to vector<8x32xf32>
    %c0_2 = arith.constant 0 : index
    %c0_3 = arith.constant 0 : index
    %2 = vector.load %arg2[%c0_2, %c0_3] : memref<32x96xf32, #tpu.memory_space<vmem>>, vector<32x96xf32>
    %cst = arith.constant dense<0.000000e+00> : vector<8x96xf32>
    %3 = tpu.matmul %1, %2, %cst {dimension_numbers = #tpu.dot_dimension_numbers<[1], [0], [0], [1], [0, 0, 1, 1], [], []>} : vector<8x32xf32>, vector<32x96xf32>, vector<8x96xf32> -> vector<8x96xf32>
    %c0_4 = arith.constant 0 : index
    %c0_5 = arith.constant 0 : index
    %4 = vector.load %arg3[%c0_4, %c0_5] : memref<1x96xf32, #tpu.memory_space<vmem>>, vector<1x96xf32>
    %5 = vector.broadcast %4 : vector<1x96xf32> to vector<8x96xf32>
    %6 = arith.addf %3, %5 : vector<8x96xf32>
    %7 = vector.extract_strided_slice %6 {offsets = [0, 0], sizes = [8, 32], strides = [1, 1]} : vector<8x96xf32> to vector<8x32xf32>
    %8 = vector.extract_strided_slice %6 {offsets = [0, 32], sizes = [8, 32], strides = [1, 1]} : vector<8x96xf32> to vector<8x32xf32>
    %9 = vector.extract_strided_slice %6 {offsets = [0, 64], sizes = [8, 32], strides = [1, 1]} : vector<8x96xf32> to vector<8x32xf32>
    %c0_6 = arith.constant 0 : index
    %c0_7 = arith.constant 0 : index
    %c0_8 = arith.constant 0 : index
    %10 = vector.load %arg4[%c0_6, %c0_7, %c0_8] : memref<4x8x32xf32, #tpu.memory_space<vmem>>, vector<4x8x32xf32>
    %c0_9 = arith.constant 0 : index
    %c0_10 = arith.constant 0 : index
    %11 = vector.load %arg5[%c0_9, %c0_10] : memref<1x32xf32, #tpu.memory_space<vmem>>, vector<1x32xf32>
    %c0_11 = arith.constant 0 : index
    %c0_12 = arith.constant 0 : index
    %12 = vector.load %arg6[%c0_11, %c0_12] : memref<1x32xf32, #tpu.memory_space<vmem>>, vector<1x32xf32>
    %c0_13 = arith.constant 0 : index
    %c0_14 = arith.constant 0 : index
    %13 = vector.load %arg7[%c0_13, %c0_14] : memref<1x32xf32, #tpu.memory_space<vmem>>, vector<1x32xf32>
    %14 = vector.extract_strided_slice %7 {offsets = [0, 0], sizes = [8, 8], strides = [1, 1]} : vector<8x32xf32> to vector<8x8xf32>
    %15 = vector.extract_strided_slice %7 {offsets = [0, 8], sizes = [8, 8], strides = [1, 1]} : vector<8x32xf32> to vector<8x8xf32>
    %16 = vector.extract_strided_slice %7 {offsets = [0, 16], sizes = [8, 8], strides = [1, 1]} : vector<8x32xf32> to vector<8x8xf32>
    %17 = vector.extract_strided_slice %7 {offsets = [0, 24], sizes = [8, 8], strides = [1, 1]} : vector<8x32xf32> to vector<8x8xf32>
    %18 = vector.shape_cast %14 : vector<8x8xf32> to vector<1x8x8xf32>
    %19 = vector.shape_cast %15 : vector<8x8xf32> to vector<1x8x8xf32>
    %20 = vector.shape_cast %16 : vector<8x8xf32> to vector<1x8x8xf32>
    %21 = vector.shape_cast %17 : vector<8x8xf32> to vector<1x8x8xf32>
    %22 = tpu.concatenate %18, %19, %20, %21 in 0 : vector<1x8x8xf32>, vector<1x8x8xf32>, vector<1x8x8xf32>, vector<1x8x8xf32> -> vector<4x8x8xf32>
    %23 = vector.extract_strided_slice %8 {offsets = [0, 0], sizes = [8, 8], strides = [1, 1]} : vector<8x32xf32> to vector<8x8xf32>
    %24 = vector.extract_strided_slice %8 {offsets = [0, 8], sizes = [8, 8], strides = [1, 1]} : vector<8x32xf32> to vector<8x8xf32>
    %25 = vector.extract_strided_slice %8 {offsets = [0, 16], sizes = [8, 8], strides = [1, 1]} : vector<8x32xf32> to vector<8x8xf32>
    %26 = vector.extract_strided_slice %8 {offsets = [0, 24], sizes = [8, 8], strides = [1, 1]} : vector<8x32xf32> to vector<8x8xf32>
    %27 = vector.shape_cast %23 : vector<8x8xf32> to vector<1x8x8xf32>
    %28 = vector.shape_cast %24 : vector<8x8xf32> to vector<1x8x8xf32>
    %29 = vector.shape_cast %25 : vector<8x8xf32> to vector<1x8x8xf32>
    %30 = vector.shape_cast %26 : vector<8x8xf32> to vector<1x8x8xf32>
    %31 = tpu.concatenate %27, %28, %29, %30 in 0 : vector<1x8x8xf32>, vector<1x8x8xf32>, vector<1x8x8xf32>, vector<1x8x8xf32> -> vector<4x8x8xf32>
    %32 = vector.extract_strided_slice %9 {offsets = [0, 0], sizes = [8, 8], strides = [1, 1]} : vector<8x32xf32> to vector<8x8xf32>
    %33 = vector.extract_strided_slice %9 {offsets = [0, 8], sizes = [8, 8], strides = [1, 1]} : vector<8x32xf32> to vector<8x8xf32>
    %34 = vector.extract_strided_slice %9 {offsets = [0, 16], sizes = [8, 8], strides = [1, 1]} : vector<8x32xf32> to vector<8x8xf32>
    %35 = vector.extract_strided_slice %9 {offsets = [0, 24], sizes = [8, 8], strides = [1, 1]} : vector<8x32xf32> to vector<8x8xf32>
    %36 = vector.shape_cast %32 : vector<8x8xf32> to vector<1x8x8xf32>
    %37 = vector.shape_cast %33 : vector<8x8xf32> to vector<1x8x8xf32>
    %38 = vector.shape_cast %34 : vector<8x8xf32> to vector<1x8x8xf32>
    %39 = vector.shape_cast %35 : vector<8x8xf32> to vector<1x8x8xf32>
    %40 = tpu.concatenate %36, %37, %38, %39 in 0 : vector<1x8x8xf32>, vector<1x8x8xf32>, vector<1x8x8xf32>, vector<1x8x8xf32> -> vector<4x8x8xf32>
    "tpu.trace_start"() <{level = 10 : i32, message = "hqd,hkd->hqk"}> : () -> ()
    %cst_15 = arith.constant dense<0.000000e+00> : vector<4x8x8xf32>
    %41 = tpu.matmul %22, %31, %cst_15 {dimension_numbers = #tpu.dot_dimension_numbers<[2], [2], [1], [1], [0, 0, 0, 1, 1, 1], [0], [0]>} : vector<4x8x8xf32>, vector<4x8x8xf32>, vector<4x8x8xf32> -> vector<4x8x8xf32>
    "tpu.trace_stop"() : () -> ()
    %cst_16 = arith.constant 0.353553385 : f32
    %42 = vector.broadcast %cst_16 : f32 to vector<4x8x8xf32>
    %43 = arith.mulf %41, %42 : vector<4x8x8xf32>
    %cst_17 = arith.constant dense<0xFF800000> : vector<4x8xf32>
    %44 = vector.multi_reduction <maximumf>, %43, %cst_17 [2] : vector<4x8x8xf32> to vector<4x8xf32>
    %45 = vector.shape_cast %44 : vector<4x8xf32> to vector<4x8x1xf32>
    %46 = vector.broadcast %45 : vector<4x8x1xf32> to vector<4x8x8xf32>
    %47 = arith.subf %43, %46 : vector<4x8x8xf32>
    %48 = math.exp %47 : vector<4x8x8xf32>
    %cst_18 = arith.constant dense<0.000000e+00> : vector<4x8xf32>
    %49 = vector.multi_reduction <add>, %48, %cst_18 [2] : vector<4x8x8xf32> to vector<4x8xf32>
    %50 = vector.shape_cast %49 : vector<4x8xf32> to vector<4x8x1xf32>
    %51 = vector.broadcast %50 : vector<4x8x1xf32> to vector<4x8x8xf32>
    %52 = arith.divf %48, %51 : vector<4x8x8xf32>
    "tpu.trace_start"() <{level = 10 : i32, message = "hqk,hkd->hqd"}> : () -> ()
    %cst_19 = arith.constant dense<0.000000e+00> : vector<4x8x8xf32>
    %53 = tpu.matmul %52, %40, %cst_19 {dimension_numbers = #tpu.dot_dimension_numbers<[2], [1], [1], [2], [0, 0, 0, 1, 1, 2], [0], [0]>} : vector<4x8x8xf32>, vector<4x8x8xf32>, vector<4x8x8xf32> -> vector<4x8x8xf32>
    "tpu.trace_stop"() : () -> ()
    %54 = vector.broadcast %11 : vector<1x32xf32> to vector<8x32xf32>
    %55 = arith.addf %1, %54 : vector<8x32xf32>
    %56 = vector.extract_strided_slice %53 {offsets = [0, 0, 0], sizes = [1, 8, 8], strides = [1, 1, 1]} : vector<4x8x8xf32> to vector<1x8x8xf32>
    %57 = vector.shape_cast %56 : vector<1x8x8xf32> to vector<8x8xf32>
    %58 = vector.extract_strided_slice %10 {offsets = [0, 0, 0], sizes = [1, 8, 32], strides = [1, 1, 1]} : vector<4x8x32xf32> to vector<1x8x32xf32>
    %59 = vector.shape_cast %58 : vector<1x8x32xf32> to vector<8x32xf32>
    %cst_20 = arith.constant dense<0.000000e+00> : vector<8x32xf32>
    %60 = tpu.matmul %57, %59, %cst_20 {dimension_numbers = #tpu.dot_dimension_numbers<[1], [0], [0], [1], [0, 0, 1, 1], [], []>} : vector<8x8xf32>, vector<8x32xf32>, vector<8x32xf32> -> vector<8x32xf32>
    %61 = arith.addf %55, %60 : vector<8x32xf32>
    %62 = vector.extract_strided_slice %53 {offsets = [1, 0, 0], sizes = [1, 8, 8], strides = [1, 1, 1]} : vector<4x8x8xf32> to vector<1x8x8xf32>
    %63 = vector.shape_cast %62 : vector<1x8x8xf32> to vector<8x8xf32>
    %64 = vector.extract_strided_slice %10 {offsets = [1, 0, 0], sizes = [1, 8, 32], strides = [1, 1, 1]} : vector<4x8x32xf32> to vector<1x8x32xf32>
    %65 = vector.shape_cast %64 : vector<1x8x32xf32> to vector<8x32xf32>
    %cst_21 = arith.constant dense<0.000000e+00> : vector<8x32xf32>
    %66 = tpu.matmul %63, %65, %cst_21 {dimension_numbers = #tpu.dot_dimension_numbers<[1], [0], [0], [1], [0, 0, 1, 1], [], []>} : vector<8x8xf32>, vector<8x32xf32>, vector<8x32xf32> -> vector<8x32xf32>
    %67 = arith.addf %61, %66 : vector<8x32xf32>
    %68 = vector.extract_strided_slice %53 {offsets = [2, 0, 0], sizes = [1, 8, 8], strides = [1, 1, 1]} : vector<4x8x8xf32> to vector<1x8x8xf32>
    %69 = vector.shape_cast %68 : vector<1x8x8xf32> to vector<8x8xf32>
    %70 = vector.extract_strided_slice %10 {offsets = [2, 0, 0], sizes = [1, 8, 32], strides = [1, 1, 1]} : vector<4x8x32xf32> to vector<1x8x32xf32>
    %71 = vector.shape_cast %70 : vector<1x8x32xf32> to vector<8x32xf32>
    %cst_22 = arith.constant dense<0.000000e+00> : vector<8x32xf32>
    %72 = tpu.matmul %69, %71, %cst_22 {dimension_numbers = #tpu.dot_dimension_numbers<[1], [0], [0], [1], [0, 0, 1, 1], [], []>} : vector<8x8xf32>, vector<8x32xf32>, vector<8x32xf32> -> vector<8x32xf32>
    %73 = arith.addf %67, %72 : vector<8x32xf32>
    %74 = vector.extract_strided_slice %53 {offsets = [3, 0, 0], sizes = [1, 8, 8], strides = [1, 1, 1]} : vector<4x8x8xf32> to vector<1x8x8xf32>
    %75 = vector.shape_cast %74 : vector<1x8x8xf32> to vector<8x8xf32>
    %76 = vector.extract_strided_slice %10 {offsets = [3, 0, 0], sizes = [1, 8, 32], strides = [1, 1, 1]} : vector<4x8x32xf32> to vector<1x8x32xf32>
    %77 = vector.shape_cast %76 : vector<1x8x32xf32> to vector<8x32xf32>
    %cst_23 = arith.constant dense<0.000000e+00> : vector<8x32xf32>
    %78 = tpu.matmul %75, %77, %cst_23 {dimension_numbers = #tpu.dot_dimension_numbers<[1], [0], [0], [1], [0, 0, 1, 1], [], []>} : vector<8x8xf32>, vector<8x32xf32>, vector<8x32xf32> -> vector<8x32xf32>
    %79 = arith.addf %73, %78 : vector<8x32xf32>
    %cst_24 = arith.constant dense<0.000000e+00> : vector<8xf32>
    %80 = vector.multi_reduction <add>, %79, %cst_24 [1] : vector<8x32xf32> to vector<8xf32>
    %81 = vector.shape_cast %80 : vector<8xf32> to vector<8x1xf32>
    %cst_25 = arith.constant 3.200000e+01 : f32
    %82 = vector.broadcast %cst_25 : f32 to vector<8x1xf32>
    %83 = arith.divf %81, %82 : vector<8x1xf32>
    %84 = vector.broadcast %83 : vector<8x1xf32> to vector<8x32xf32>
    %85 = arith.subf %79, %84 : vector<8x32xf32>
    %86 = arith.mulf %85, %85 : vector<8x32xf32>
    %cst_26 = arith.constant dense<0.000000e+00> : vector<8xf32>
    %87 = vector.multi_reduction <add>, %86, %cst_26 [1] : vector<8x32xf32> to vector<8xf32>
    %88 = vector.shape_cast %87 : vector<8xf32> to vector<8x1xf32>
    %cst_27 = arith.constant 3.200000e+01 : f32
    %89 = vector.broadcast %cst_27 : f32 to vector<8x1xf32>
    %90 = arith.divf %88, %89 : vector<8x1xf32>
    %91 = vector.broadcast %83 : vector<8x1xf32> to vector<8x32xf32>
    %92 = arith.subf %79, %91 : vector<8x32xf32>
    %cst_28 = arith.constant 9.99999974E-6 : f32
    %93 = vector.broadcast %cst_28 : f32 to vector<8x1xf32>
    %94 = arith.addf %90, %93 : vector<8x1xf32>
    %95 = math.rsqrt %94 : vector<8x1xf32>
    %96 = vector.broadcast %95 : vector<8x1xf32> to vector<8x32xf32>
    %97 = arith.mulf %92, %96 : vector<8x32xf32>
    %98 = vector.broadcast %12 : vector<1x32xf32> to vector<8x32xf32>
    %99 = arith.mulf %97, %98 : vector<8x32xf32>
    %100 = vector.broadcast %13 : vector<1x32xf32> to vector<8x32xf32>
    %101 = arith.addf %99, %100 : vector<8x32xf32>
    %c0_29 = arith.constant 0 : index
    %c0_30 = arith.constant 0 : index
    %c0_31 = arith.constant 0 : index
    %102 = vector.load %arg8[%c0_29, %c0_30, %c0_31] : memref<1x8x32xf32, #tpu.memory_space<vmem>>, vector<1x8x32xf32>
    %103 = vector.shape_cast %102 : vector<1x8x32xf32> to vector<8x32xf32>
    %104 = vector.shape_cast %101 : vector<8x32xf32> to vector<1x8x32xf32>
    tpu.vector_store %arg8[%c0_29, %c0_30, %c0_31], %104 {strides = array<i32>} : memref<1x8x32xf32, #tpu.memory_space<vmem>>, vector<1x8x32xf32>,
    return
  }
  func.func @transform_0(%arg0: i32) -> (i32, i32, i32) {
    %c0_i32 = arith.constant 0 : i32
    %c0_i32_0 = arith.constant 0 : i32
    %c0_i32_1 = arith.constant 0 : i32
    return %arg0, %c0_i32, %c0_i32_0 : i32, i32, i32
  }
  func.func @transform_1(%arg0: i32) -> (i32, i32) {
    %c0_i32 = arith.constant 0 : i32
    %c0_i32_0 = arith.constant 0 : i32
    %c0_i32_1 = arith.constant 0 : i32
    return %c0_i32, %c0_i32_0 : i32, i32
  }
  func.func @transform_2(%arg0: i32) -> (i32, i32) {
    %c0_i32 = arith.constant 0 : i32
    %c0_i32_0 = arith.constant 0 : i32
    %c0_i32_1 = arith.constant 0 : i32
    return %c0_i32, %c0_i32_0 : i32, i32
  }
  func.func @transform_3(%arg0: i32) -> (i32, i32, i32) {
    %c0_i32 = arith.constant 0 : i32
    %c0_i32_0 = arith.constant 0 : i32
    %c0_i32_1 = arith.constant 0 : i32
    %c0_i32_2 = arith.constant 0 : i32
    return %c0_i32, %c0_i32_0, %c0_i32_1 : i32, i32, i32
  }
  func.func @transform_4(%arg0: i32) -> (i32, i32) {
    %c0_i32 = arith.constant 0 : i32
    %c0_i32_0 = arith.constant 0 : i32
    %c0_i32_1 = arith.constant 0 : i32
    return %c0_i32, %c0_i32_0 : i32, i32
  }
  func.func @transform_5(%arg0: i32) -> (i32, i32) {
    %c0_i32 = arith.constant 0 : i32
    %c0_i32_0 = arith.constant 0 : i32
    %c0_i32_1 = arith.constant 0 : i32
    return %c0_i32, %c0_i32_0 : i32, i32
  }
  func.func @transform_6(%arg0: i32) -> (i32, i32) {
    %c0_i32 = arith.constant 0 : i32
    %c0_i32_0 = arith.constant 0 : i32
    %c0_i32_1 = arith.constant 0 : i32
    return %c0_i32, %c0_i32_0 : i32, i32
  }
  func.func @transform_7(%arg0: i32) -> (i32, i32, i32) {
    %c0_i32 = arith.constant 0 : i32
    %c0_i32_0 = arith.constant 0 : i32
    %c0_i32_1 = arith.constant 0 : i32
    return %arg0, %c0_i32, %c0_i32_0 : i32, i32, i32
  }
}

</mosaic_0001>

<bundles_post_ra>
// kernel: tpu_custom_call.1
= control target key start
LH: loop header
LB: loop body
LE: loop exit
PB: predicated region body
PF: predicated region fallthrough
CT: control target
= control target key end

     0   :  { %12 = vsyncpa [#allocation3], 0  ;;  %s2310_s0 = inlined_call_operand.hbm [shape: f32[2,8,32], index: 0, kind: input, shape index: {}]   ;;  %s2311_s1 = inlined_call_operand.hbm [shape: f32[32,96], index: 1, kind: input, shape index: {}]   ;;  %s2312_s2 = inlined_call_operand.vmem [shape: f32[1,96], index: 2, kind: input, shape index: {}]   ;;  %s2313_s3 = inlined_call_operand.hbm [shape: f32[4,8,32], index: 3, kind: input, shape index: {}]   ;;  %s2314_s4 = inlined_call_operand.vmem [shape: f32[1,32], index: 4, kind: input, shape index: {}]   ;;  %s2315_s5 = inlined_call_operand.vmem [shape: f32[1,32], index: 5, kind: input, shape index: {}]   ;;  %s2316_s6 = inlined_call_operand.vmem [shape: f32[1,32], index: 6, kind: input, shape index: {}]   ;;  %s2317_s7 = inlined_call_operand.hbm [shape: f32[2,8,32], index: 7, kind: output, shape index: {}]  }
   0x1   :  { %14 = vsyncpa [#allocation3 + $0x1], 0 }
   0x2   :  { %15 = vsyncpa [#allocation6], 0 }
   0x3   :  { %16 = vsyncpa [#allocation4], 0 }
   0x4   :  { %18 = vsyncpa [#allocation4 + $0x1], 0  ;;  %s1972_s24 = smov 0   ;;  %s1974_s25 = smov 0  }
   0x5   :  { %s1976_s26 = smov 0   ;;  %s1978_s27 = smov 0  }
   0x6 LB: > { %s1993_s28 = sadd.s32 4294967295, %s1916_s27   ;;  %s1515_s29 = sadd.s32 4294967294, %s1916_s27   ;;  %s1916_s27 = sphi %s1978_s27, %s2337_s27   ;;  %s1912_s26 = sphi %s1976_s26, %s2336_s26   ;;  %s1908_s25 = sphi %s1974_s25, %s2335_s25   ;;  %s1904_s24 = sphi %s1972_s24, %s2334_s24  }
   0x7   : > { %p44_p0 = scmp.ne.s32.totalorder %s1908_s25, %s1904_s24  ;;  %p2318_p1 = scmp.eq.s32.totalorder %s1993_s28, 0 }
   0x8   : > { %p200_p3 = scmp.eq.s32.totalorder %s1515_s29, 1  ;;  %p1516_p5 = scmp.ge.s32.totalorder %s1916_s27, 1 }
   0x9   : > { %p2002_p4 = por %p2318_p1, %p44_p0  ;;  %p207_p7 = scmp.lt.s32.totalorder %s1916_s27, 3 }
   0xa   : > { %p2007_p6 = por %p200_p3, %p44_p0  ;;  %s1918_s10 = smov [#allocation5]  }
   0xb   : > { %s2321_s30 = scalar_select %p2002_p4, 1, 0 }
   0xc   : > { %s2322_s8 = scalar_select %p2007_p6, 1, 0 }
   0xd   : > { %p2012_p8 = pnand %p1516_p5, %p207_p7  ;;  %s219_s11 = sshll.u32 %s1918_s10, 4  ;;  %s2016_s11 = int_to_ptr.vmem [resolvable:$true] %s219_s11 }
   0xe   : > { %s1919_s13 = smov [#allocation7]   ;;  %s1760_s17 = scalar_lea.hbm %s2311_s1, 512 }
   0xf   : > { %p1677_p9 = pneg %p2012_p8  ;;  %s235_s14 = sshll.u32 %s1919_s13, 4  ;;  %s2027_s14 = int_to_ptr.vmem [resolvable:$true] %s235_s14 }
  0x10   : > { %p1761_p12 = scmp.ne.s32.totalorder %s2311_s1, %s1760_s17  ;;  %p1767_p5 = scmp.lt.u32.totalorder %s1760_s17, %s2311_s1 }
  0x11   : > { %p2023_p11 = pnand %p1677_p9, %p2318_p1 }
  0x13   : > { %p1762_p13 = pneg %p2023_p11 }
  0x15   : > { %p1763_p0 = pnand %p1762_p13, %p1761_p12 }
  0x17   : > { %p1764_p3 = pneg %p1763_p0 }
  0x19   : > { %p1769_p7 = pnand %p1767_p5, %p1764_p3 }
  0x1b   : > { %1772 = shalt.err (!%p1769_p7)
}
  0x1c   : > { %s1773_s22 = scalar_lea.vmem %s2016_s11, 512  ;;  %p1781_p2 = scmp.lt.s32.totalorder %s2016_s11, %s2016_s11 }
  0x1d   : > { %p1774_p9 = scmp.ne.s32.totalorder %s2016_s11, %s1773_s22  ;;  %p1782_p12 = scmp.lt.s32.totalorder %s1773_s22, %s1773_s22 }
  0x1f   : > { %p1776_p10 = pnand %p1774_p9, %p1762_p13  ;;  %p1783_p0 = por %p1782_p12, %p1781_p2 }
  0x21   : > { %p1777_p1 = pneg %p1776_p10 }
  0x23   : > { %p1784_p6 = pnand %p1783_p0, %p1777_p1 }
  0x25   : > { %1787 = shalt.err (!%p1784_p6)
}
  0x26   : > { %s1920_s23 = smov 128   ;;  %s1921_s29 = smov 8  }
  0x27   : > { %1680 = dma.hbm_to_vmem [thread:$0]  (!%p2023_p11), %s2311_s1, 512, %s2016_s11, [#allocation6], %s1920_s23, %s1920_s23, %s1921_s29  }
  0x28   : > { %s1788_s17 = scalar_lea.hbm %s2313_s3, 512 }
  0x29   : > { %p1789_p2 = scmp.ne.s32.totalorder %s2313_s3, %s1788_s17  ;;  %p1795_p10 = scmp.lt.u32.totalorder %s1788_s17, %s2313_s3 }
  0x2b   : > { %p1791_p1 = pnand %p1789_p2, %p1762_p13 }
  0x2d   : > { %p1792_p6 = pneg %p1791_p1 }
  0x2f   : > { %p1797_p3 = pnand %p1795_p10, %p1792_p6 }
  0x31   : > { %1800 = shalt.err (!%p1797_p3)
}
  0x32   : > { %s1801_s11 = scalar_lea.vmem %s2027_s14, 512  ;;  %p1809_p12 = scmp.lt.s32.totalorder %s2027_s14, %s2027_s14 }
  0x33   : > { %p1802_p5 = scmp.ne.s32.totalorder %s2027_s14, %s1801_s11  ;;  %p1810_p0 = scmp.lt.s32.totalorder %s1801_s11, %s1801_s11 }
  0x35   : > { %p1804_p7 = pnand %p1802_p5, %p1762_p13  ;;  %p1811_p2 = por %p1810_p0, %p1809_p12 }
  0x37   : > { %p1805_p9 = pneg %p1804_p7 }
  0x39   : > { %p1812_p1 = pnand %p1811_p2, %p1805_p9 }
  0x3b   : > { %1815 = shalt.err (!%p1812_p1)
}
  0x3c   : > { %1683 = dma.hbm_to_vmem [thread:$0]  (!%p2023_p11), %s2313_s3, 512, %s2027_s14, [#allocation6], %s1920_s23, %s1920_s23, %s1921_s29  }
  0x3d   : > { %s2082_s13 = sadd.s32 1, %s1916_s27   ;;  %s31_s12 = sadd.s32 1, %s1912_s26 }
  0x3e   : > { %s28_s15 = ssub.s32 %s1916_s27, %s2082_s13  ;;  %p38_p13 = scmp.ne.s32.totalorder %s1912_s26, %s1908_s25 }
  0x3f   : > { %p29_p6 = scmp.eq.s32.totalorder %s28_s15, 0  ;;  %p39_p10 = scmp.eq.s32.totalorder %s1916_s27, 0 }
  0x40   : > { %p2325_p3 = scmp.eq.s32.totalorder %s1993_s28, 1  ;;  %p1694_p7 = scmp.lt.s32.totalorder %s1916_s27, 2 }
  0x41   : > { %s2098_s17 = scalar_select %p29_p6, %s1912_s26, %s31_s12  }
  0x42   : > { %p2092_p5 = por %p2325_p3, %p38_p13  ;;  %p40_p9 = por %p39_p10, %p38_p13 }
  0x43   : > { %s258_s18 = sand.u32 1, %s1912_s26   ;;  %s1521_s14 = sshll.u32 %s1916_s27, 7 }
  0x44   : > { %s2326_s16 = scalar_select %p2092_p5, 1, 0 }
  0x45   : > { %s1520_s19 = sshll.u32 %s258_s18, 3  ;;  %s2105_s20 = scalar_lea.hbm %s2310_s0, %s1521_s14 }
  0x46   : > { %s262_s21 = scalar_lea.vmem [#allocation2], %s1520_s19  ;;  %p2109_p11 = pnand %p1694_p7, %p40_p9 }
  0x47   : > { %s269_s11 = sshll.u32 %s262_s21, 4  ;;  %s259_s10 = scalar_lea.sflag [#allocation3], %s258_s18  ;;  %s2107_s11 = int_to_ptr.vmem [resolvable:$true] %s269_s11 }
  0x48   : > { %s1816_s12 = scalar_lea.hbm %s2105_s20, 128  ;;  %p1818_p0 = pneg %p2109_p11 }
  0x49   : > { %p1817_p12 = scmp.ne.s32.totalorder %s2105_s20, %s1816_s12  ;;  %s1821_s14 = scalar_lea.hbm %s2310_s0, 256 }
  0x4a   : > { %p1822_p13 = scmp.lt.u32.totalorder %s2105_s20, %s2310_s0  ;;  %p1823_p6 = scmp.lt.u32.totalorder %s1821_s14, %s1816_s12 }
  0x4b   : > { %p1819_p2 = pnand %p1818_p0, %p1817_p12  ;;  %p1825_p3 = scmp.lt.u32.totalorder %s1816_s12, %s2105_s20 }
  0x4c   : > { %p1824_p10 = por %p1823_p6, %p1822_p13 }
  0x4d   : > { %p1820_p1 = pneg %p1819_p2 }
  0x4e   : > { %p1826_p7 = por %p1825_p3, %p1824_p10 }
  0x50   : > { %p1827_p9 = pnand %p1826_p7, %p1820_p1 }
  0x52   : > { %1830 = shalt.err (!%p1827_p9)
}
  0x53   : > { %s1831_s18 = scalar_lea.vmem %s2107_s11, 128  ;;  %s1922_s21 = smov [#allocation2]  }
  0x54   : > { %p1832_p12 = scmp.ne.s32.totalorder %s2107_s11, %s1831_s18  ;;  %s1836_s15 = sshll.u32 %s1922_s21, 4  ;;  %s1837_s15 = int_to_ptr.vmem [resolvable:$false] %s1836_s15 }
  0x55   : > { %s1838_s19 = scalar_lea.vmem %s1837_s15, 256  ;;  %p1839_p4 = scmp.lt.s32.totalorder %s2107_s11, %s1837_s15 }
  0x56   : > { %p1834_p2 = pnand %p1832_p12, %p1818_p0  ;;  %p1840_p13 = scmp.lt.s32.totalorder %s1838_s19, %s1831_s18 }
  0x58   : > { %p1835_p5 = pneg %p1834_p2  ;;  %p1841_p6 = por %p1840_p13, %p1839_p4 }
  0x5a   : > { %p1842_p10 = pnand %p1841_p6, %p1835_p5 }
  0x5c   : > { %1845 = shalt.err (!%p1842_p10)
}
  0x5d   : > { %1687 = dma.hbm_to_vmem [thread:$0]  (!%p2109_p11), %s2105_s20, 128, %s2107_s11, %s259_s10  }
  0x5e   : > { %278 = sbr.rel (%p2012_p8) target bundleno = 1896 (0x768), region = 48  ;;  %s2141_s12 = sand.u32 (!%p2012_p8), 1, %s1908_s25  }
  0x5f   : > { %s1523_s14 = sshll.u32 (!%p2012_p8), %s2141_s12, 3  ;;  %s281_s23 = scalar_lea.sflag (!%p2012_p8), [#allocation3], %s2141_s12 }
  0x60   : > { %s284_s29 = scalar_lea.vmem (!%p2012_p8), [#allocation2], %s1523_s14  ;;  %p2328_p4 = scmp.ne.s32.totalorder (!%p2012_p8), %s2321_s30, 0 }
  0x65   : > { %1891 = dma.done.wait (%p2328_p4), %s281_s23, 128  }
  0x66   : > { %1893 = vsyncadd (%p2328_p4), %s281_s23, 4294967168  ;;  %p2329_p5 = scmp.eq.s32.totalorder %s1993_s28, 0 }
  0x68   : > { %1895 = dma.done.wait (%p2329_p5), [#allocation6], 1024   ;;  %p2330_p8 = pmov %p2329_p5 }
  0x69   : > { %v1923_v0 = vmov 0.0|0.0   ;;  %vm1924_vm0 = vmmov 0   ;;  %v1925_v1 = vmov 0.0   ;;  %v324_v2 = vld [vmem:[#allocation5] sm:$0xff]  ;;  %v325_v3 = vld [vmem:[#allocation5 + $0x8] sm:$0xff]  ;;  %v326_v4 = vld [vmem:[#allocation5 + $0x10] sm:$0xff] }
  0x6a   : > { %1897 = vsyncadd (%p2330_p8), [#allocation6], 4294966272  ;;  %1652 = vmatprep.subr.bf16.mxu1 %v1923_v0  ;;  %1589 = vmatprep.mubr.msk.f32.mxu1 %vm1924_vm0, %v1925_v1  ;;  %v1653_v5 = vpack.c.bf16 %v325_v3, %v324_v2  ;;  %v327_v6 = vld [vmem:[#allocation5 + $0x18] sm:$0xff]  ;;  %vm335_vm1 = vcmask 261120   ;;  %v1527_v9 = vld [vmem:[%s2312_s2] ss:$0 sm:$0xff] }
  0x6b   : > { %1602 = vmatprep.subr.mxu0 %v1925_v1  ;;  %1604 = vmatprep.mubr.msk.f32.mxu0 %vm1924_vm0, %v1925_v1  ;;  %v1656_v7 = vpack.c.bf16 %v327_v6, %v326_v4  ;;  %v2160_v8 = vld [vmem:[%s284_s29] sm:$0xff]  ;;  %s1926_s20 = smov 104   ;;  %s1927_s11 = smov 120   ;;  %vm425_vm2 = vcmask 64512  }
  0x6c   : > { %1654 = vmatpush3.bf16.msra.mxu1 %v1653_v5  ;;  %s1928_s22 = smov 96   ;;  %s1929_s10 = smov 112  }
  0x6d   : > { %1655 = vmatprep.subr.bf16.mxu1 %v1923_v0  ;;  %s1930_s18 = smov 64   ;;  %s1549_s9 = sshll.u32 %s1993_s28, 7 }
  0x6e   : > { %s1413_s21 = scalar_lea.sflag [#allocation4], %s2141_s12  ;;  %p2331_p0 = scmp.ne.s32.totalorder %s2326_s16, 0 }
  0x6f   : > { %s1931_s28 = smov [#allocation8]  }
  0x70   : > { %1657 = vmatpush3.bf16.msra.mxu1 %v1656_v7 }
  0x71   : > { %1592 = vmatprep.subr.mxu1 %v1925_v1 }
  0x73   : > { %1590 = vmatmul.mubr.msk.f32.vlgmr.msra.gmra.mrb[0].mxu1 %vm335_vm1, %v2160_v8 }
  0x74   : > { %1594 = vmatprep.mubr.msk.f32.mxu1 %vm1924_vm0, %v1925_v1 }
 0x146   : > { %v405_v10 = vpop.f32.mrb[0].mxu1 }
 0x147   : > { %v2170_v11 = vadd.f32 %v1527_v9, %v405_v10  ;;  %v1591_v12 = vpop.f32.mrb[1].mxu1  ;;  %v409_v10 = vld [vmem:[#allocation7] sm:$0xff] }
 0x149   : > { %421 = vrot.lane.b32.xlu1 %v2170_v11, %s1926_s20  ;;  %417 = vrot.lane.b32.xlu0 %v2170_v11, %s1927_s11  ;;  %s322_s20 = scalar_lea.vmem [#allocation8], %s1523_s14  ;;  %s1850_s14 = sshll.u32 %s1931_s28, 4  ;;  %s1851_s14 = int_to_ptr.vmem [resolvable:$false] %s1850_s14 }
 0x14a   : > { %s1426_s11 = sshll.u32 %s322_s20, 4  ;;  %s1852_s19 = scalar_lea.vmem %s1851_s14, 256  ;;  %s2267_s11 = int_to_ptr.vmem [resolvable:$true] %s1426_s11 }
 0x14b   : > { %s1846_s15 = scalar_lea.vmem %s2267_s11, 128  ;;  %p1853_p7 = scmp.lt.s32.totalorder %s2267_s11, %s1851_s14 }
 0x14c   : > { %p1847_p11 = scmp.ne.s32.totalorder %s2267_s11, %s1846_s15  ;;  %p1854_p9 = scmp.lt.s32.totalorder %s1852_s19, %s1846_s15 }
 0x14d   : > { %423 = vrot.lane.b32.xlu1 %v2170_v11, %s1928_s22  ;;  %419 = vrot.lane.b32.xlu0 %v2170_v11, %s1929_s10 }
 0x14e   : > { %p1848_p1 = pnand %p1847_p11, %p2331_p0  ;;  %p1855_p12 = por %p1854_p9, %p1853_p7 }
 0x150   : > { %p1849_p3 = pneg %p1848_p1 }
 0x152   : > { %p1856_p2 = pnand %p1855_p12, %p1849_p3 }
 0x1bb   : > { %v2176_v13 = vpop.permute.xlu1 %421  ;;  %v2178_v14 = vpop.permute.xlu0 %417 }
 0x1bc   : > { %500 = vrot.lane.b32.xlu0 %v2178_v14, %s1928_s22 }
 0x1bf   : > { %v424_v15 = vpop.permute.xlu1 %423  ;;  %v2181_v16 = vpop.permute.xlu0 %419 }
 0x1c0   : > { %1593 = vmatpush3.xpose.msk.msra.mxu1 %vm425_vm2, %v424_v15  ;;  %652 = vrot.lane.b32.xlu0 %v2176_v13, %s1928_s22 }
 0x1c1   : > { %576 = vrot.lane.b32.xlu1 %v2181_v16, %s1928_s22  ;;  %1597 = vmatprep.subr.mxu1 %v1925_v1 }
 0x1c3   : > { %1595 = vmatmul.mubr.msk.f32.vlgmr.msra.gmra.mrb[2].mxu1 %vm425_vm2, %v2170_v11 }
 0x1c4   : > { %1599 = vmatprep.mubr.msk.f32.mxu1 %vm1924_vm0, %v1925_v1 }
 0x22e   : > { %v501_v17 = vpop.permute.xlu0 %500 }
 0x22f   : > { %1598 = vmatpush3.xpose.msk.msra.mxu1 %vm425_vm2, %v501_v17  ;;  %v412_v17 = vld [vmem:[#allocation7 + $0x18] sm:$0xff] }
 0x230   : > { %1607 = vmatprep.subr.mxu1 %v1925_v1 }
 0x232   : > { %1600 = vmatmul.mubr.msk.f32.vlgmr.msra.gmra.mrb[4].mxu1 %vm425_vm2, %v2178_v14  ;;  %v653_v18 = vpop.permute.xlu0 %652 }
 0x233   : > { %v577_v19 = vpop.permute.xlu1 %576  ;;  %1608 = vmatpush3.xpose.msk.msra.mxu1 %vm425_vm2, %v653_v18  ;;  %1609 = vmatprep.mubr.msk.f32.mxu1 %vm1924_vm0, %v1925_v1 }
 0x234   : > { %1603 = vmatpush3.xpose.msk.msra.mxu0 %vm425_vm2, %v577_v19  ;;  %1617 = vmatprep.subr.mxu1 %v1925_v1 }
 0x235   : > { %1612 = vmatprep.subr.mxu0 %v1925_v1 }
 0x236   : > { %1610 = vmatmul.mubr.msk.f32.vlgmr.msra.gmra.mrb[6].mxu1 %vm425_vm2, %v2176_v13 }
 0x237   : > { %1605 = vmatmul.mubr.msk.f32.vlgmr.msra.gmra.mrb[0].mxu0 %vm425_vm2, %v2181_v16  ;;  %1619 = vmatprep.mubr.msk.f32.mxu1 %vm1924_vm0, %v1925_v1 }
 0x238   : > { %1614 = vmatprep.mubr.msk.f32.mxu0 %vm1924_vm0, %v1925_v1 }
 0x296   : > { %v496_v20 = vpop.f32.mrb[2].mxu1 }
 0x297   : > { %v728_v21 = vmul.f32 0.35355338, %v496_v20  ;;  %v1596_v22 = vpop.f32.mrb[3].mxu1 }
 0x298   : > { %v1541_v22 = vld [vmem:[%s2314_s4] ss:$0 sm:$0xff] }
 0x299   : > { %v732_v23 = vsel %vm425_vm2, %v728_v21, -inf }
 0x29a   : > { %733 = vmax.xlane.f32.xlu1 %v732_v23  ;;  %v1086_v23 = vadd.f32 %v1541_v22, %v2160_v8 }
 0x305   : > { %v572_v24 = vpop.f32.mrb[4].mxu1 }
 0x306   : > { %v729_v25 = vmul.f32 0.35355338, %v572_v24  ;;  %v1601_v26 = vpop.f32.mrb[5].mxu1 }
 0x308   : > { %v735_v27 = vsel %vm425_vm2, %v729_v25, -inf }
 0x309   : > { %736 = vmax.xlane.f32.xlu0 %v735_v27  ;;  %v724_v28 = vpop.f32.mrb[6].mxu1 }
 0x30a   : > { %v648_v29 = vpop.f32.mrb[0].mxu0  ;;  %v731_v30 = vmul.f32 0.35355338, %v724_v28  ;;  %v1611_v31 = vpop.f32.mrb[7].mxu1 }
 0x30b   : > { %v730_v32 = vmul.f32 0.35355338, %v648_v29  ;;  %v1606_v33 = vpop.f32.mrb[1].mxu0 }
 0x30c   : > { %v741_v34 = vsel %vm425_vm2, %v731_v30, -inf }
 0x30d   : > { %v738_v35 = vsel %vm425_vm2, %v730_v32, -inf  ;;  %742 = vmax.xlane.f32.xlu1 %v741_v34 }
 0x30e   : > { %739 = vmax.xlane.f32.xlu0 %v738_v35  ;;  %v1546_v35 = vld [vmem:[%s2315_s5] ss:$0 sm:$0xff] }
 0x327   : > { %v734_v36 = vpop.xlane.xlu1 %733 }
 0x328   : > { %v744_v37 = vsub.f32 %v728_v21, %v734_v36 }
 0x32a   : > { %v748_v38 = vmul.f32 1.442695, %v744_v37  ;;  %v1547_v37 = vld [vmem:[%s2316_s6] ss:$0 sm:$0xff] }
 0x32c   : > { %1742 = vpow2.f32 %v748_v38 }
 0x336   : > { %v1743_v39 = vpop.eup %1742 }
 0x337   : > { %v756_v40 = vsel %vm425_vm2, %v1743_v39, 0.0 }
 0x338   : > { %757 = vadd.xlane.f32.xlu0 %v756_v40 }
 0x396   : > { %v737_v41 = vpop.xlane.xlu0 %736 }
 0x397   : > { %v745_v42 = vsub.f32 %v729_v25, %v737_v41 }
 0x399   : > { %v750_v43 = vmul.f32 1.442695, %v745_v42 }
 0x39a   : > { %v743_v51 = vpop.xlane.xlu1 %742 }
 0x39b   : > { %1744 = vpow2.f32 %v750_v43  ;;  %v740_v44 = vpop.xlane.xlu0 %739  ;;  %v747_v52 = vsub.f32 %v731_v30, %v743_v51 }
 0x39c   : > { %v746_v45 = vsub.f32 %v730_v32, %v740_v44 }
 0x39d   : > { %v754_v53 = vmul.f32 1.442695, %v747_v52 }
 0x39e   : > { %v752_v46 = vmul.f32 1.442695, %v746_v45 }
 0x3a0   : > { %1746 = vpow2.f32 %v752_v46 }
 0x3a1   : > { %1748 = vpow2.f32 %v754_v53 }
 0x3a5   : > { %v1745_v47 = vpop.eup %1744 }
 0x3a6   : > { %v759_v48 = vsel %vm425_vm2, %v1745_v47, 0.0 }
 0x3a7   : > { %760 = vadd.xlane.f32.xlu1 %v759_v48 }
 0x3aa   : > { %v1747_v49 = vpop.eup %1746 }
 0x3ab   : > { %v762_v50 = vsel %vm425_vm2, %v1747_v49, 0.0  ;;  %v1749_v54 = vpop.eup %1748 }
 0x3ac   : > { %763 = vadd.xlane.f32.xlu0 %v762_v50  ;;  %v765_v55 = vsel %vm425_vm2, %v1749_v54, 0.0 }
 0x3b8   : > { %852 = vrot.lane.b32.xlu1 %v2178_v14, %s1930_s18 }
 0x3c2   : > { %776 = vrot.lane.b32.xlu0 %v2170_v11, %s1930_s18  ;;  %v410_v11 = vld [vmem:[#allocation7 + $0x8] sm:$0xff] }
 0x3c5   : > { %v758_v56 = vpop.xlane.xlu0 %757 }
 0x3c6   : > { %1004 = vrot.lane.b32.xlu0 %v2176_v13, %s1930_s18  ;;  %1750 = vrcp.f32 %v758_v56 }
 0x3d0   : > { %v1751_v60 = vpop.eup %1750 }
 0x3d1   : > { %v769_v61 = vmul.f32 %v1751_v60, %v1743_v39 }
 0x3dc   : > { %766 = vadd.xlane.f32.xlu1 %v765_v55 }
 0x3ed   : > { %928 = vrot.lane.b32.xlu1 %v2181_v16, %s1930_s18  ;;  %v411_v16 = vld [vmem:[#allocation7 + $0x10] sm:$0xff]  ;;  %s2265_s18 = scalar_lea.hbm %s2317_s7, %s1549_s9 }
 0x434   : > { %v761_v57 = vpop.xlane.xlu1 %760 }
 0x435   : > { %1752 = vrcp.f32 %v761_v57 }
 0x438   : > { %v853_v58 = vpop.permute.xlu1 %852 }
 0x439   : > { %v764_v59 = vpop.xlane.xlu0 %763  ;;  %1618 = vmatpush3.msra.mxu1 %v853_v58 }
 0x43a   : > { %1627 = vmatprep.subr.mxu1 %v1925_v1  ;;  %1754 = vrcp.f32 %v764_v59 }
 0x43d   : > { %v777_v62 = vpop.permute.xlu0 %776 }
 0x43e   : > { %1613 = vmatpush3.msra.mxu0 %v777_v62 }
 0x43f   : > { %v1753_v63 = vpop.eup %1752  ;;  %1615 = vmatmul.mubr.msk.f32.vlgmr.msra.gmra.mrb[2].mxu0 %vm425_vm2, %v769_v61  ;;  %1622 = vmatprep.subr.mxu0 %v1925_v1 }
 0x440   : > { %v771_v0 = vmul.f32 %v1753_v63, %v1745_v47  ;;  %1624 = vmatprep.mubr.msk.f32.mxu0 %vm1924_vm0, %v1925_v1 }
 0x441   : > { %v1005_v2 = vpop.permute.xlu0 %1004 }
 0x442   : > { %1620 = vmatmul.mubr.msk.f32.vlgmr.msra.gmra.mrb[8].mxu1 %vm425_vm2, %v771_v0 }
 0x443   : > { %1628 = vmatpush3.msra.mxu1 %v1005_v2  ;;  %1629 = vmatprep.mubr.msk.f32.mxu1 %vm1924_vm0, %v1925_v1 }
 0x444   : > { %v1755_v4 = vpop.eup %1754 }
 0x445   : > { %v773_v5 = vmul.f32 %v1755_v4, %v1747_v49 }
 0x469   : > { %v767_v3 = vpop.xlane.xlu1 %766 }
 0x46a   : > { %1756 = vrcp.f32 %v767_v3 }
 0x46d   : > { %v929_v6 = vpop.permute.xlu1 %928 }
 0x46e   : > { %1623 = vmatpush3.msra.mxu0 %v929_v6 }
 0x46f   : > { %1625 = vmatmul.mubr.msk.f32.vlgmr.msra.gmra.mrb[4].mxu0 %vm425_vm2, %v773_v5  ;;  %1632 = vmatprep.subr.mxu0 %v1925_v1 }
 0x470   : > { %1634 = vmatprep.mubr.msk.f32.mxu0 %vm1924_vm0, %v1925_v1  ;;  %1633 = vmatpush3.msra.mxu0 %v409_v10 }
 0x471   : > { %1637 = vmatprep.subr.mxu0 %v1925_v1 }
 0x474   : > { %v1757_v7 = vpop.eup %1756 }
 0x475   : > { %v775_v9 = vmul.f32 %v1757_v7, %v1749_v54 }
 0x477   : > { %1630 = vmatmul.mubr.msk.f32.vlgmr.msra.gmra.mrb[10].mxu1 %vm425_vm2, %v775_v9 }
 0x512   : > { %v848_v12 = vpop.f32.mrb[2].mxu0 }
 0x513   : > { %v1616_v13 = vpop.f32.mrb[3].mxu0  ;;  %1635 = vmatmul.mubr.msk.f32.vlgmr.msra.gmra.mrb[6].mxu0 %vm425_vm2, %v848_v12 }
 0x514   : > { %1638 = vmatpush3.msra.mxu0 %v410_v11  ;;  %1639 = vmatprep.mubr.msk.f32.mxu0 %vm1924_vm0, %v1925_v1 }
 0x515   : > { %v924_v14 = vpop.f32.mrb[8].mxu1  ;;  %1642 = vmatprep.subr.mxu0 %v1925_v1 }
 0x516   : > { %v1621_v15 = vpop.f32.mrb[9].mxu1 }
 0x51b   : > { %1640 = vmatmul.mubr.msk.f32.vlgmr.msra.gmra.mrb[6].mxu0 %vm425_vm2, %v924_v14 }
 0x51c   : > { %1643 = vmatpush3.msra.mxu0 %v411_v16  ;;  %1644 = vmatprep.mubr.msk.f32.mxu0 %vm1924_vm0, %v1925_v1 }
 0x51d   : > { %1647 = vmatprep.subr.mxu0 %v1925_v1 }
 0x542   : > { %v1000_v18 = vpop.f32.mrb[4].mxu0 }
 0x543   : > { %v1626_v19 = vpop.f32.mrb[5].mxu0  ;;  %1645 = vmatmul.mubr.msk.f32.vlgmr.msra.gmra.mrb[6].mxu0 %vm425_vm2, %v1000_v18 }
 0x544   : > { %1648 = vmatpush3.msra.mxu0 %v412_v17  ;;  %1649 = vmatprep.mubr.msk.f32.mxu0 %vm1924_vm0, %v1925_v1 }
 0x54a   : > { %v1076_v20 = vpop.f32.mrb[10].mxu1 }
 0x54b   : > { %v1631_v21 = vpop.f32.mrb[11].mxu1  ;;  %1650 = vmatmul.mubr.msk.f32.vlgmr.msra.gmra.mrb[6].mxu0 %vm425_vm2, %v1076_v20 }
 0x61e   : > { %v1378_v24 = vpop.f32.mrb[6].mxu0 }
 0x61f   : > { %v1658_v25 = vadd.f32 %v1378_v24, %v1086_v23  ;;  %v1651_v26 = vpop.f32.mrb[7].mxu0 }
 0x621   : > { %v1383_v27 = vsel %vm335_vm1, %v1658_v25, 0.0 }
 0x622   : > { %1384 = vadd.xlane.f32.xlu1 %v1383_v27 }
 0x6af   : > { %v1385_v28 = vpop.xlane.xlu1 %1384 }
 0x6b0   : > { %v1387_v1 = vmul.f32 0.03125, %v1385_v28 }
 0x6b2   : > { %v1388_v29 = vsub.f32 %v1658_v25, %v1387_v1 }
 0x6b4   : > { %v1389_v30 = vmul.f32 %v1388_v29, %v1388_v29 }
 0x6b6   : > { %v1390_v31 = vsel %vm335_vm1, %v1389_v30, 0.0 }
 0x6b7   : > { %1391 = vadd.xlane.f32.xlu0 %v1390_v31 }
 0x744   : > { %v1392_v32 = vpop.xlane.xlu0 %1391 }
 0x745   : > { %v1393_v33 = vmul.f32 0.03125, %v1392_v32 }
 0x747   : > { %v1394_v34 = vadd.f32 1e-05, %v1393_v33 }
 0x749   : > { %1758 = vrsqrt.f32 %v1394_v34 }
 0x753   : > { %v1759_v8 = vpop.eup %1758 }
 0x754   : > { %v1396_v36 = vmul.f32 %v1759_v8, %v1388_v29 }
 0x756   : > { %v1403_v38 = vmul.f32 %v1546_v35, %v1396_v36 }
 0x758   : > { %v1410_v39 = vadd.f32 %v1547_v37, %v1403_v38 }
 0x75a   : > { %1411 = vst.msk [vmem:[%s322_s20] sm:$0xff] %vm335_vm1, %v1410_v39 }
 0x75b   : > { %1859 = shalt.err (!%p1856_p2)
}
 0x75c   : > { %s1860_s12 = scalar_lea.hbm %s2265_s18, 128  ;;  %s1864_s30 = scalar_lea.hbm %s2317_s7, 256 }
 0x75d   : > { %p1861_p13 = scmp.ne.s32.totalorder %s2265_s18, %s1860_s12  ;;  %p1865_p4 = scmp.lt.u32.totalorder %s2265_s18, %s2317_s7 }
 0x75e   : > { %p1866_p5 = scmp.lt.u32.totalorder %s1864_s30, %s1860_s12  ;;  %p1868_p11 = scmp.lt.u32.totalorder %s1860_s12, %s2265_s18 }
 0x75f   : > { %p1862_p6 = pnand %p1861_p13, %p2331_p0 }
 0x760   : > { %p1867_p8 = por %p1866_p5, %p1865_p4 }
 0x761   : > { %p1863_p10 = pneg %p1862_p6 }
 0x762   : > { %p1869_p1 = por %p1868_p11, %p1867_p8 }
 0x764   : > { %p1870_p3 = pnand %p1869_p1, %p1863_p10 }
 0x766   : > { %1873 = shalt.err (!%p1870_p3)
}
 0x767   : > { %1675 = dma.vmem_to_hbm [thread:$0]  (%p2331_p0), %s2267_s11, 128, %s2265_s18, %s1413_s21  }
 0x768 PF: > { %s1438_s22 = sand.u32 1, %s1904_s24   ;;  %p2332_p7 = scmp.ne.s32.totalorder %s2322_s8, 0 }
 0x769   : > { %p2333_p9 = scmp.ge.s32.totalorder %s1916_s27, 2  ;;  %s1439_s10 = scalar_lea.sflag [#allocation4], %s1438_s22 }
 0x76b   : > { %p1689_p12 = pnand %p2333_p9, %p2332_p7 }
 0x76d   : > { %1899 = dma.done.wait (!%p1689_p12), %s1439_s10, 128  }
 0x76e   : > { %1901 = vsyncadd (!%p1689_p12), %s1439_s10, 4294967168  ;;  %p21_p2 = scmp.ge.s32.totalorder %s2082_s13, 4   ;;  %s2334_s24 = smov %s1908_s25 }
 0x76f   : > { %s2335_s25 = smov %s1912_s26  ;;  %s2336_s26 = smov %s2098_s17 }
 0x770   : > { %s2337_s27 = smov %s2082_s13  ;;  %23 = sbr.rel (!%p21_p2) target bundleno = 6 (0x6), region = 101 }
 0x777   :  { %1444 = vsyncpa [#allocation3], 1 }
 0x778   :  { %1446 = vsyncpa [#allocation3 + $0x1], 1 }
 0x779   :  { %1447 = vsyncpa [#allocation6], 1 }
 0x77a   :  { %1448 = vsyncpa [#allocation4], 1 }
 0x77b   :  { %1450 = vsyncpa [#allocation4 + $0x1], 1 }

</bundles_post_ra>
